<compile_context>
chip_gen: v6e
topology: v6e:2x2x1
jax: 0.10.0
libtpu: 0.0.40
codegen_flags: <defaults>
</compile_context>

<pallas_src>
import functools

import jax
import jax.numpy as jnp
from jax.experimental import pallas as pl
from jax.experimental.pallas import tpu as pltpu


def _round_up(x, m):
    return ((x + m - 1) // m) * m


def _choose_tiles(n, tile_m, tile_k):
    """Clamp requested tile sizes to the (padded) node count.

    * tile_m is capped at ~n_up/2 so grid axis 0 keeps >= 2 row tiles
      (megacore sharding on v7x's 2 TensorCores; harmless on v5e/v6e).
    * tile_k is forced to a multiple of tile_m so node padding is just
      round_up(n, tile_k) (no lcm blow-up for mismatched tiles).
    """
    tile_m = _round_up(tile_m, 128)
    tile_k = _round_up(tile_k, 128)
    n_up = _round_up(max(n, 1), 128)
    half = max(128, (n_up // 2) // 128 * 128)
    tile_m = min(tile_m, half)
    tile_k = min(tile_k, n_up)
    tile_k = max(tile_m, (tile_k // tile_m) * tile_m)   # tile_m | tile_k
    n_p = _round_up(n, tile_k)                          # tile_k | n_p
    return tile_m, tile_k, n_p


def _pad2d(arr, shape):
    if arr.shape == shape:
        return arr
    return jnp.zeros(shape, arr.dtype).at[: arr.shape[0], : arr.shape[1]].set(arr)


def prepare_adjacency(adj, *, tile_m=512, tile_k=512):
    """One-time pad + int8 down-cast of a 0/1 adjacency matrix.

    Graphs are static across layers / training steps: call this once, cache
    the result, and pass it to gin_conv. This hoists the O(N^2) f32 read +
    padded write out of the per-call hot path, and the int8 copy is the one
    the kernel streams (1 B per edge slot).
    """
    n = adj.shape[0]
    _, _, n_p = _choose_tiles(n, tile_m, tile_k)
    adj_i8 = adj.astype(jnp.int8)          # exact for 0/1 adjacency
    if adj_i8.shape != (n_p, n_p):
        adj_i8 = jnp.zeros((n_p, n_p), jnp.int8).at[:n, :n].set(adj_i8)
    return adj_i8


def _make_kernel(tile_k, x_resident):
    def gin_kernel(eps_ref, a_ref, xk_ref, xrow_ref, w1_ref, b1_ref, w2_ref,
                   b2_ref, o_ref, acc_ref):
        k = pl.program_id(1)

        # Initialize the accumulator with the (1 + eps) * x self term
        # (saves a zero-fill per row tile and the epilogue add).
        @pl.when(k == 0)
        def _():
            acc_ref[...] = (1.0 + eps_ref[0, 0]) * xrow_ref[...]

        if x_resident:
            # Whole (padded) x is resident in VMEM; slice the K block.
            start = pl.multiple_of(k * tile_k, tile_k)
            xk = xk_ref[pl.ds(start, tile_k), :]
        else:
            xk = xk_ref[...]

        # A is exactly 0/1: int8 -> bf16 convert is lossless and cheap (VPU).
        # bf16 LHS with f32 RHS and f32 accumulation keeps the MXU off the
        # slow f32 x f32 decomposition without any VALU up-cast of the tile.
        acc_ref[...] += jnp.dot(
            a_ref[...].astype(jnp.bfloat16),
            xk,
            preferred_element_type=jnp.float32,
        )

        @pl.when(k == pl.num_programs(1) - 1)
        def _():
            # nn(h): Linear -> ReLU -> Linear (all lane-dense, padded to 128).
            h = acc_ref[...]
            z = jnp.maximum(
                jnp.dot(h, w1_ref[...], preferred_element_type=jnp.float32)
                + b1_ref[...],
                0.0,
            )
            o_ref[...] = (
                jnp.dot(z, w2_ref[...], preferred_element_type=jnp.float32)
                + b2_ref[...]
            ).astype(o_ref.dtype)

    return gin_kernel


@functools.partial(jax.jit, static_argnames=("tile_m", "tile_k", "x_resident"))
def gin_conv(eps, adj, x, w1, b1, w2, b2, *, tile_m=512, tile_k=512,
             x_resident=None):
    """GINConv forward: nn((1 + eps) * x + A @ x).

    `adj` may be the raw (N, N) 0/1 adjacency (any float/int dtype) or,
    preferably, the pre-padded int8 copy from `prepare_adjacency`.
    """
    n, f_in = x.shape
    hidden = w1.shape[1]
    f_out = w2.shape[1]

    tile_m, tile_k, n_p = _choose_tiles(n, tile_m, tile_k)

    # Lane-dense feature padding (multiples of 128); zero-padding is exact
    # through the MLP (padded hidden cols are relu(0 + 0) = 0, padded out = 0).
    f_in_p = _round_up(f_in, 128)
    hid_p = _round_up(hidden, 128)
    f_out_p = _round_up(f_out, 128)

    # Adjacency: use the prepared int8 copy if it matches, else pad+cast here.
    if adj.dtype == jnp.int8 and adj.shape == (n_p, n_p):
        adj_p = adj
    else:
        adj_p = jnp.zeros((n_p, n_p), jnp.int8).at[:n, :n].set(
            adj[:n, :n].astype(jnp.int8))

    x_p = _pad2d(x.astype(jnp.float32), (n_p, f_in_p))
    w1_p = _pad2d(w1.astype(jnp.float32), (f_in_p, hid_p))
    b1_p = _pad2d(b1.astype(jnp.float32), (1, hid_p))
    w2_p = _pad2d(w2.astype(jnp.float32), (hid_p, f_out_p))
    b2_p = _pad2d(b2.astype(jnp.float32), (1, f_out_p))

    # Resident x removes the per-row-tile re-streaming of x; only use it when
    # the padded x (double-buffered) comfortably fits VMEM, otherwise keep the
    # streaming path so VMEM stays independent of N (v7x has only 64 MiB).
    if x_resident is None:
        x_resident = (n_p * f_in_p * 4) <= 8 * 1024 * 1024

    if x_resident:
        xk_spec = pl.BlockSpec((n_p, f_in_p), lambda i, k: (0, 0))
    else:
        xk_spec = pl.BlockSpec((tile_k, f_in_p), lambda i, k: (k, 0))

    grid = (n_p // tile_m, n_p // tile_k)

    out = pl.pallas_call(
        _make_kernel(tile_k, x_resident),
        out_shape=jax.ShapeDtypeStruct((n_p, f_out_p), jnp.float32),
        grid_spec=pltpu.PrefetchScalarGridSpec(
            num_scalar_prefetch=0,
            grid=grid,
            in_specs=[
                # eps scalar (shape (1,1), matching torch.Tensor([[eps]]))
                pl.BlockSpec(memory_space=pltpu.MemorySpace.SMEM),
                # adjacency tile (row i, K-block k), streamed as int8
                pl.BlockSpec((tile_m, tile_k), lambda i, k: (i, k)),
                # x for the A @ x contraction (resident or K-streamed)
                xk_spec,
                # x row-tile for the (1 + eps) * x term (constant across k)
                pl.BlockSpec((tile_m, f_in_p), lambda i, k: (i, 0)),
                # MLP params, full (lane-padded) blocks
                pl.BlockSpec((f_in_p, hid_p), lambda i, k: (0, 0)),
                pl.BlockSpec((1, hid_p), lambda i, k: (0, 0)),
                pl.BlockSpec((hid_p, f_out_p), lambda i, k: (0, 0)),
                pl.BlockSpec((1, f_out_p), lambda i, k: (0, 0)),
            ],
            out_specs=pl.BlockSpec((tile_m, f_out_p), lambda i, k: (i, 0)),
            scratch_shapes=[pltpu.VMEM((tile_m, f_in_p), jnp.float32)],
        ),
        compiler_params=pltpu.CompilerParams(
            dimension_semantics=("parallel", "arbitrary"),
            # Conservative for v7x (64 MiB physical). On v5e/v6e this could be
            # raised to 64 MiB+ with 1024-tiles / larger resident x.
            vmem_limit_bytes=32 * 1024 * 1024,
        ),
    )(eps, adj_p, x_p, x_p, w1_p, b1_p, w2_p, b2_p)

    return out[:n, :f_out]


def reference(eps, adj, x, w1, b1, w2, b2):
    h = (1.0 + eps[0, 0]) * x + adj @ x
    z = jnp.maximum(h @ w1 + b1, 0.0)
    return z @ w2 + b2


if __name__ == "__main__":
    N, F_IN, HIDDEN, F_OUT = 256, 32, 64, 32

    key = jax.random.PRNGKey(0)
    k_adj, k_x, k_w1, k_b1, k_w2, k_b2 = jax.random.split(key, 6)

    # random undirected graph: symmetric 0/1 adjacency, no self-loops
    upper = (jax.random.uniform(k_adj, (N, N)) < 0.1).astype(jnp.float32)
    upper = jnp.triu(upper, k=1)
    adj = upper + upper.T
    assert bool(jnp.all((adj == 0) | (adj == 1))), "adjacency must be 0/1"

    x = jax.random.normal(k_x, (N, F_IN), dtype=jnp.float32)

    # MLP params (nn = Linear(F_IN, HIDDEN) -> ReLU -> Linear(HIDDEN, F_OUT))
    w1 = jax.random.normal(k_w1, (F_IN, HIDDEN), dtype=jnp.float32) * 0.1
    b1 = jax.random.normal(k_b1, (1, HIDDEN), dtype=jnp.float32) * 0.1
    w2 = jax.random.normal(k_w2, (HIDDEN, F_OUT), dtype=jnp.float32) * 0.1
    b2 = jax.random.normal(k_b2, (1, F_OUT), dtype=jnp.float32) * 0.1

    # eps parameter (trainable scalar in the module, shape (1,1))
    eps = jnp.full((1, 1), 0.1, dtype=jnp.float32)

    ref = reference(eps, adj, x, w1, b1, w2, b2)

    # Preferred path: one-time adjacency preparation (hoisted out of hot path),
    # resident-x variant picked automatically for this small graph.
    adj_i8 = prepare_adjacency(adj)
    out = jax.block_until_ready(gin_conv(eps, adj_i8, x, w1, b1, w2, b2))
    assert out.shape == (N, F_OUT)
    assert jnp.allclose(out, ref, atol=1e-4, rtol=1e-4), "mismatch (resident x)"

    # Fallback path: raw f32 adjacency + streamed x (N-independent VMEM).
    out2 = jax.block_until_ready(
        gin_conv(eps, adj, x, w1, b1, w2, b2, x_resident=False))
    assert jnp.allclose(out2, ref, atol=1e-4, rtol=1e-4), "mismatch (streamed x)"

    print("KERNEL_OK")
</pallas_src>

<mosaic_0001>
module attributes {stable_mosaic.version = 11 : i64} {
  func.func @gin_kernel(%arg0: i32, %arg1: i32, %arg2: memref<1x1xf32, #tpu.memory_space<smem>>, %arg3: memref<128x256xi8, #tpu.memory_space<vmem>>, %arg4: memref<256x128xf32, #tpu.memory_space<vmem>>, %arg5: memref<128x128xf32, #tpu.memory_space<vmem>>, %arg6: memref<128x128xf32, #tpu.memory_space<vmem>>, %arg7: memref<1x128xf32, #tpu.memory_space<vmem>>, %arg8: memref<128x128xf32, #tpu.memory_space<vmem>>, %arg9: memref<1x128xf32, #tpu.memory_space<vmem>>, %arg10: memref<128x128xf32, #tpu.memory_space<vmem>>, %arg11: memref<128x128xf32, #tpu.memory_space<vmem>>) attributes {dimension_semantics = [#tpu.dimension_semantics<parallel>, #tpu.dimension_semantics<arbitrary>], iteration_bounds = array<i64: 2, 1>, scalar_prefetch = 0 : i64, scratch_operands = 1 : i64, tpu.core_type = #tpu.core_type<tc>, window_params = [{transform_indices = @transform_0, window_bounds = array<i64: 1, 1>}, {transform_indices = @transform_1, window_bounds = array<i64: 128, 256>}, {pipeline_mode = #tpu.pipeline_mode<synchronous>, transform_indices = @transform_2, window_bounds = array<i64: 256, 128>}, {transform_indices = @transform_3, window_bounds = array<i64: 128, 128>}, {pipeline_mode = #tpu.pipeline_mode<synchronous>, transform_indices = @transform_4, window_bounds = array<i64: 128, 128>}, {pipeline_mode = #tpu.pipeline_mode<synchronous>, transform_indices = @transform_5, window_bounds = array<i64: 1, 128>}, {pipeline_mode = #tpu.pipeline_mode<synchronous>, transform_indices = @transform_6, window_bounds = array<i64: 128, 128>}, {pipeline_mode = #tpu.pipeline_mode<synchronous>, transform_indices = @transform_7, window_bounds = array<i64: 1, 128>}, {transform_indices = @transform_8, window_bounds = array<i64: 128, 128>}]} {
    %c0_i32 = arith.constant 0 : i32
    %0 = arith.cmpi eq, %arg1, %c0_i32 : i32
    %1 = arith.extui %0 : i1 to i32
    %c0_i32_0 = arith.constant 0 : i32
    %2 = arith.cmpi ne, %1, %c0_i32_0 : i32
    scf.if %2 {
      %c0_9 = arith.constant 0 : index
      %c0_10 = arith.constant 0 : index
      %16 = memref.load %arg2[%c0_9, %c0_10] : memref<1x1xf32, #tpu.memory_space<smem>>
      %cst_11 = arith.constant 1.000000e+00 : f32
      %17 = arith.addf %cst_11, %16 : f32
      %c0_12 = arith.constant 0 : index
      %c0_13 = arith.constant 0 : index
      %18 = vector.load %arg5[%c0_12, %c0_13] : memref<128x128xf32, #tpu.memory_space<vmem>>, vector<128x128xf32>
      %19 = vector.broadcast %17 : f32 to vector<128x128xf32>
      %20 = arith.mulf %19, %18 : vector<128x128xf32>
      %c0_14 = arith.constant 0 : index
      %c0_15 = arith.constant 0 : index
      %21 = vector.load %arg11[%c0_14, %c0_15] : memref<128x128xf32, #tpu.memory_space<vmem>>, vector<128x128xf32>
      tpu.vector_store %arg11[%c0_14, %c0_15], %20 {strides = array<i32>} : memref<128x128xf32, #tpu.memory_space<vmem>>, vector<128x128xf32>,
    } else {
    }
    %c256_i32 = arith.constant 256 : i32
    %3 = arith.muli %arg1, %c256_i32 : i32
    %4 = tpu.assume_multiple %3, 256 : i32
    %5 = arith.index_cast %4 : i32 to index
    %c0 = arith.constant 0 : index
    %6 = vector.load %arg4[%5, %c0] : memref<256x128xf32, #tpu.memory_space<vmem>>, vector<256x128xf32>
    %c0_1 = arith.constant 0 : index
    %c0_2 = arith.constant 0 : index
    %7 = vector.load %arg11[%c0_1, %c0_2] : memref<128x128xf32, #tpu.memory_space<vmem>>, vector<128x128xf32>
    %c0_3 = arith.constant 0 : index
    %c0_4 = arith.constant 0 : index
    %8 = vector.load %arg3[%c0_3, %c0_4] : memref<128x256xi8, #tpu.memory_space<vmem>>, vector<128x256xi8>
    %9 = arith.sitofp %8 : vector<128x256xi8> to vector<128x256xbf16>
    %cst = arith.constant dense<0.000000e+00> : vector<128x128xf32>
    %10 = tpu.matmul %9, %6, %cst {dimension_numbers = #tpu.dot_dimension_numbers<[1], [0], [0], [1], [0, 0, 1, 1], [], []>} : vector<128x256xbf16>, vector<256x128xf32>, vector<128x128xf32> -> vector<128x128xf32>
    %11 = arith.addf %7, %10 : vector<128x128xf32>
    %c0_5 = arith.constant 0 : index
    %c0_6 = arith.constant 0 : index
    %12 = vector.load %arg11[%c0_5, %c0_6] : memref<128x128xf32, #tpu.memory_space<vmem>>, vector<128x128xf32>
    tpu.vector_store %arg11[%c0_5, %c0_6], %11 {strides = array<i32>} : memref<128x128xf32, #tpu.memory_space<vmem>>, vector<128x128xf32>,
    %c0_i32_7 = arith.constant 0 : i32
    %13 = arith.cmpi eq, %arg1, %c0_i32_7 : i32
    %14 = arith.extui %13 : i1 to i32
    %c0_i32_8 = arith.constant 0 : i32
    %15 = arith.cmpi ne, %14, %c0_i32_8 : i32
    scf.if %15 {
      %c0_9 = arith.constant 0 : index
      %c0_10 = arith.constant 0 : index
      %16 = vector.load %arg11[%c0_9, %c0_10] : memref<128x128xf32, #tpu.memory_space<vmem>>, vector<128x128xf32>
      %c0_11 = arith.constant 0 : index
      %c0_12 = arith.constant 0 : index
      %17 = vector.load %arg6[%c0_11, %c0_12] : memref<128x128xf32, #tpu.memory_space<vmem>>, vector<128x128xf32>
      %cst_13 = arith.constant dense<0.000000e+00> : vector<128x128xf32>
      %18 = tpu.matmul %16, %17, %cst_13 {dimension_numbers = #tpu.dot_dimension_numbers<[1], [0], [0], [1], [0, 0, 1, 1], [], []>} : vector<128x128xf32>, vector<128x128xf32>, vector<128x128xf32> -> vector<128x128xf32>
      %c0_14 = arith.constant 0 : index
      %c0_15 = arith.constant 0 : index
      %19 = vector.load %arg7[%c0_14, %c0_15] : memref<1x128xf32, #tpu.memory_space<vmem>>, vector<1x128xf32>
      %20 = vector.broadcast %19 : vector<1x128xf32> to vector<128x128xf32>
      %21 = arith.addf %18, %20 : vector<128x128xf32>
      %cst_16 = arith.constant 0.000000e+00 : f32
      %22 = vector.broadcast %cst_16 : f32 to vector<128x128xf32>
      %23 = arith.maximumf %21, %22 : vector<128x128xf32>
      %c0_17 = arith.constant 0 : index
      %c0_18 = arith.constant 0 : index
      %24 = vector.load %arg8[%c0_17, %c0_18] : memref<128x128xf32, #tpu.memory_space<vmem>>, vector<128x128xf32>
      %cst_19 = arith.constant dense<0.000000e+00> : vector<128x128xf32>
      %25 = tpu.matmul %23, %24, %cst_19 {dimension_numbers = #tpu.dot_dimension_numbers<[1], [0], [0], [1], [0, 0, 1, 1], [], []>} : vector<128x128xf32>, vector<128x128xf32>, vector<128x128xf32> -> vector<128x128xf32>
      %c0_20 = arith.constant 0 : index
      %c0_21 = arith.constant 0 : index
      %26 = vector.load %arg9[%c0_20, %c0_21] : memref<1x128xf32, #tpu.memory_space<vmem>>, vector<1x128xf32>
      %27 = vector.broadcast %26 : vector<1x128xf32> to vector<128x128xf32>
      %28 = arith.addf %25, %27 : vector<128x128xf32>
      %c0_22 = arith.constant 0 : index
      %c0_23 = arith.constant 0 : index
      %29 = vector.load %arg10[%c0_22, %c0_23] : memref<128x128xf32, #tpu.memory_space<vmem>>, vector<128x128xf32>
      tpu.vector_store %arg10[%c0_22, %c0_23], %28 {strides = array<i32>} : memref<128x128xf32, #tpu.memory_space<vmem>>, vector<128x128xf32>,
    } else {
    }
    return
  }
  func.func @transform_0(%arg0: i32, %arg1: i32) -> (i32, i32) {
    %c0_i32 = arith.constant 0 : i32
    %c0_i32_0 = arith.constant 0 : i32
    %c0_i32_1 = arith.constant 0 : i32
    return %c0_i32, %c0_i32_0 : i32, i32
  }
  func.func @transform_1(%arg0: i32, %arg1: i32) -> (i32, i32) {
    %c0_i32 = arith.constant 0 : i32
    return %arg0, %arg1 : i32, i32
  }
  func.func @transform_2(%arg0: i32, %arg1: i32) -> (i32, i32) {
    %c0_i32 = arith.constant 0 : i32
    %c0_i32_0 = arith.constant 0 : i32
    %c0_i32_1 = arith.constant 0 : i32
    return %c0_i32, %c0_i32_0 : i32, i32
  }
  func.func @transform_3(%arg0: i32, %arg1: i32) -> (i32, i32) {
    %c0_i32 = arith.constant 0 : i32
    %c0_i32_0 = arith.constant 0 : i32
    return %arg0, %c0_i32 : i32, i32
  }
  func.func @transform_4(%arg0: i32, %arg1: i32) -> (i32, i32) {
    %c0_i32 = arith.constant 0 : i32
    %c0_i32_0 = arith.constant 0 : i32
    %c0_i32_1 = arith.constant 0 : i32
    return %c0_i32, %c0_i32_0 : i32, i32
  }
  func.func @transform_5(%arg0: i32, %arg1: i32) -> (i32, i32) {
    %c0_i32 = arith.constant 0 : i32
    %c0_i32_0 = arith.constant 0 : i32
    %c0_i32_1 = arith.constant 0 : i32
    return %c0_i32, %c0_i32_0 : i32, i32
  }
  func.func @transform_6(%arg0: i32, %arg1: i32) -> (i32, i32) {
    %c0_i32 = arith.constant 0 : i32
    %c0_i32_0 = arith.constant 0 : i32
    %c0_i32_1 = arith.constant 0 : i32
    return %c0_i32, %c0_i32_0 : i32, i32
  }
  func.func @transform_7(%arg0: i32, %arg1: i32) -> (i32, i32) {
    %c0_i32 = arith.constant 0 : i32
    %c0_i32_0 = arith.constant 0 : i32
    %c0_i32_1 = arith.constant 0 : i32
    return %c0_i32, %c0_i32_0 : i32, i32
  }
  func.func @transform_8(%arg0: i32, %arg1: i32) -> (i32, i32) {
    %c0_i32 = arith.constant 0 : i32
    %c0_i32_0 = arith.constant 0 : i32
    return %arg0, %c0_i32 : i32, i32
  }
}

</mosaic_0001>

<bundles_post_ra>
// kernel: gin_conv.1
= control target key start
LH: loop header
LB: loop body
LE: loop exit
PB: predicated region body
PF: predicated region fallthrough
CT: control target
= control target key end

     0   :  { %s1494_s29 = smov 0   ;;  %s1496_s30 = smov 0   ;;  %s1807_s0 = inlined_call_operand.<no memory space> [shape: f32[1,1], index: 0, kind: input, shape index: {}]   ;;  %s1808_s1 = inlined_call_operand.vmem [shape: s8[256,256], index: 1, kind: input, shape index: {}]   ;;  %s1809_s2 = inlined_call_operand.vmem [shape: f32[256,128], index: 2, kind: input, shape index: {}, may-alias: {2,3}]   ;;  %s1810_s3 = inlined_call_operand.vmem [shape: f32[256,128], index: 3, kind: input, shape index: {}, may-alias: {2,3}]   ;;  %s1811_s4 = inlined_call_operand.vmem [shape: f32[128,128], index: 4, kind: input, shape index: {}]   ;;  %s1812_s5 = inlined_call_operand.vmem [shape: f32[1,128], index: 5, kind: input, shape index: {}]   ;;  %s1813_s6 = inlined_call_operand.vmem [shape: f32[128,128], index: 6, kind: input, shape index: {}]   ;;  %s1814_s7 = inlined_call_operand.vmem [shape: f32[1,128], index: 7, kind: input, shape index: {}]   ;;  %s1815_s8 = inlined_call_operand.vmem [shape: f32[256,128], index: 8, kind: output, shape index: {}]  }
   0x1   :  { %13 = sst [smem:[#allocation3]] %s1807_s0  ;;  %s1498_s9 = smov 0  }
   0x2 LB: > { %s31_s0 = sadd.s32 1, %s1440_s30  ;;  %p1129_p0 = scmp.ge.s32.totalorder %s1444_s9, 1  ;;  %s1444_s9 = sphi %s1498_s9, %s19_s9   ;;  %s1440_s30 = sphi %s1496_s30, %s1817_s30   ;;  %s1436_s29 = sphi %s1494_s29, %s1816_s29  }
   0x3   : > { %p33_p1 = scmp.ge.s32.totalorder %s31_s0, 2  ;;  %p295_p2 = scmp.lt.s32.totalorder %s1444_s9, 3 }
   0x5   : > { %s1819_s0 = smov (%p33_p1, %s31_s0), 0  ;;  %p296_p3 = pnand %p1129_p0, %p295_p2 }
   0x6   : > { %s1130_s16 = sshll.u32 (!%p296_p3), %s1436_s29, 2  ;;  %s1133_s21 = sshll.u32 (!%p296_p3), %s1436_s29, 4 }
   0x7   : > { %299 = sbr.rel (%p296_p3) target bundleno = 702 (0x2be), region = 52  ;;  %p341_p4 = scmp.lt.s32.totalorder (!%p296_p3), %s1130_s16, 7 }
   0x8   : > { %p352_p5 = scmp.lt.s32.totalorder (!%p296_p3), %s1133_s21, 31  ;;  %s367_s22 = sld [smem:[#allocation3]] (!%p296_p3) }
   0xc   : > { %v451_v0 = vld [vmem:[%s1809_s2 + $0xf8] sm:$0xff]  ;;  %v450_v2 = vld [vmem:[%s1809_s2 + $0xf0] sm:$0xff]  ;;  %v449_v4 = vld [vmem:[%s1809_s2 + $0xe8] sm:$0xff]  ;;  %s1821_s16 = smov (!%p341_p4, %s1130_s16), 7  ;;  %s1823_s21 = smov (!%p352_p5, %s1133_s21), 31 }
   0xd   : > { %v435_v1 = vld [vmem:[%s1809_s2 + $0x78] sm:$0xff]  ;;  %1142 = vmatprep.subr.mxu0 %v451_v0  ;;  %v434_v3 = vld [vmem:[%s1809_s2 + $0x70] sm:$0xff]  ;;  %v433_v5 = vld [vmem:[%s1809_s2 + $0x68] sm:$0xff]  ;;  %s1141_s27 = sshll.u32 %s1821_s16, 4  ;;  %s1134_s23 = sshll.u32 %s1823_s21, 3 }
   0xe   : > { %1143 = vmatpush3.msra.mxu0 %v435_v1  ;;  %v448_v6 = vld [vmem:[%s1809_s2 + $0xe0] sm:$0xff]  ;;  %v447_v8 = vld [vmem:[%s1809_s2 + $0xd8] sm:$0xff]  ;;  %s1548_s15 = scalar_lea.vmem %s1808_s1, %s1141_s27  ;;  %v446_v10 = vld [vmem:[%s1809_s2 + $0xd0] sm:$0xff]  ;;  %s368_s24 = sadd.f32 1.0, %s367_s22 }
   0xf   : > { %1144 = vmatprep.subr.mxu0 %v450_v2  ;;  %v432_v7 = vld [vmem:[%s1809_s2 + $0x60] sm:$0xff]  ;;  %v431_v9 = vld [vmem:[%s1809_s2 + $0x58] sm:$0xff]  ;;  %v430_v11 = vld [vmem:[%s1809_s2 + $0x50] sm:$0xff]  ;;  %s1688_s27 = scalar_lea.vmem %s1810_s3, %s1134_s23  ;;  %s1780_s28 = scalar_lea.vmem %s1815_s8, %s1134_s23 }
  0x10   : > { %1145 = vmatpush3.msra.mxu0 %v434_v3  ;;  %v445_v12 = vld [vmem:[%s1809_s2 + $0xc8] sm:$0xff]  ;;  %v444_v16 = vld [vmem:[%s1809_s2 + $0xc0] sm:$0xff]  ;;  %v687_v18 = vld [vmem:[%s1811_s4 + $0x78] sm:$0xff] }
  0x11   : > { %1146 = vmatprep.subr.mxu0 %v449_v4  ;;  %v1560_v13 = vld [vmem:[%s1548_s15 + $0x8] sm:$0xff]  ;;  %v428_v17 = vld [vmem:[%s1809_s2 + $0x40] sm:$0xff]  ;;  %v686_v19 = vld [vmem:[%s1811_s4 + $0x70] sm:$0xff]  ;;  %1286 = vmatprep.subr.mxu1 %v687_v18 }
  0x12   : > { %1147 = vmatpush3.msra.mxu0 %v433_v5  ;;  %v429_v14 = vld [vmem:[%s1809_s2 + $0x48] sm:$0xff]  ;;  %v477_v15 = vunpack.c.l.s8.bf16 %v1560_v13  ;;  %v443_v20 = vld [vmem:[%s1809_s2 + $0xb8] sm:$0xff]  ;;  %1287 = vmatpush3.msra.mxu1 %v687_v18  ;;  %v442_v23 = vld [vmem:[%s1809_s2 + $0xb0] sm:$0xff]  ;;  %v479_v46 = vunpack.c.h.s8.bf16 %v1560_v13 }
  0x13   : > { %1148 = vmatprep.subr.mxu0 %v448_v6  ;;  %v427_v21 = vld [vmem:[%s1809_s2 + $0x38] sm:$0xff]  ;;  %v685_v22 = vld [vmem:[%s1811_s4 + $0x68] sm:$0xff]  ;;  %1288 = vmatprep.subr.mxu1 %v686_v19  ;;  %v426_v24 = vld [vmem:[%s1809_s2 + $0x30] sm:$0xff] }
  0x14   : > { %1149 = vmatpush3.msra.mxu0 %v432_v7  ;;  %556 = vmatprep.mubr.bf16.mxu0 %v477_v15  ;;  %v684_v25 = vld [vmem:[%s1811_s4 + $0x60] sm:$0xff]  ;;  %v441_v26 = vld [vmem:[%s1809_s2 + $0xa8] sm:$0xff]  ;;  %v683_v28 = vld [vmem:[%s1811_s4 + $0x58] sm:$0xff] }
  0x15   : > { %1150 = vmatprep.subr.mxu0 %v447_v8  ;;  %1289 = vmatpush3.msra.mxu1 %v686_v19  ;;  %v425_v27 = vld [vmem:[%s1809_s2 + $0x28] sm:$0xff]  ;;  %v440_v29 = vld [vmem:[%s1809_s2 + $0xa0] sm:$0xff]  ;;  %v682_v31 = vld [vmem:[%s1811_s4 + $0x50] sm:$0xff] }
  0x16   : > { %1151 = vmatpush3.msra.mxu0 %v431_v9  ;;  %1290 = vmatprep.subr.mxu1 %v685_v22  ;;  %v424_v30 = vld [vmem:[%s1809_s2 + $0x20] sm:$0xff]  ;;  %v439_v32 = vld [vmem:[%s1809_s2 + $0x98] sm:$0xff]  ;;  %v681_v34 = vld [vmem:[%s1811_s4 + $0x48] sm:$0xff]  ;;  %v1690_v9 = vstv %s368_s24 }
  0x17   : > { %1152 = vmatprep.subr.mxu0 %v446_v10  ;;  %1291 = vmatpush3.msra.mxu1 %v685_v22  ;;  %v423_v33 = vld [vmem:[%s1809_s2 + $0x18] sm:$0xff]  ;;  %v438_v35 = vld [vmem:[%s1809_s2 + $0x90] sm:$0xff]  ;;  %v680_v37 = vld [vmem:[%s1811_s4 + $0x40] sm:$0xff] }
  0x18   : > { %1153 = vmatpush3.msra.mxu0 %v430_v11  ;;  %1292 = vmatprep.subr.mxu1 %v684_v25  ;;  %v422_v36 = vld [vmem:[%s1809_s2 + $0x10] sm:$0xff]  ;;  %v437_v38 = vld [vmem:[%s1809_s2 + $0x88] sm:$0xff]  ;;  %v468_v39 = vld [vmem:[%s1548_s15] sm:$0xff] }
  0x19   : > { %1154 = vmatprep.subr.mxu0 %v445_v12  ;;  %1293 = vmatpush3.msra.mxu1 %v684_v25  ;;  %v421_v40 = vld [vmem:[%s1809_s2 + $0x8] sm:$0xff]  ;;  %v679_v41 = vld [vmem:[%s1811_s4 + $0x38] sm:$0xff]  ;;  %v436_v42 = vld [vmem:[%s1809_s2 + $0x80] sm:$0xff]  ;;  %v476_v44 = vunpack.c.l.s8.bf16 %v468_v39  ;;  %v478_v49 = vunpack.c.h.s8.bf16 %v468_v39 }
  0x1a   : > { %1155 = vmatpush3.msra.mxu0 %v429_v14  ;;  %1294 = vmatprep.subr.mxu1 %v683_v28  ;;  %v420_v43 = vld [vmem:[%s1809_s2] sm:$0xff]  ;;  %v678_v45 = vld [vmem:[%s1811_s4 + $0x30] sm:$0xff]  ;;  %v677_v47 = vld [vmem:[%s1811_s4 + $0x28] sm:$0xff] }
  0x1b   : > { %1156 = vmatprep.subr.mxu0 %v444_v16  ;;  %1295 = vmatpush3.msra.mxu1 %v683_v28  ;;  %v471_v48 = vld [vmem:[%s1548_s15 + $0x18] sm:$0xff]  ;;  %v470_v51 = vld [vmem:[%s1548_s15 + $0x10] sm:$0xff]  ;;  %v473_v54 = vld [vmem:[%s1548_s15 + $0x28] sm:$0xff] }
  0x1c   : > { %1157 = vmatpush3.msra.mxu0 %v428_v17  ;;  %1296 = vmatprep.subr.mxu1 %v682_v31  ;;  %v481_v50 = vunpack.c.l.s8.bf16 %v471_v48  ;;  %v480_v52 = vunpack.c.l.s8.bf16 %v470_v51  ;;  %v483_v53 = vunpack.c.h.s8.bf16 %v471_v48  ;;  %v482_v55 = vunpack.c.h.s8.bf16 %v470_v51  ;;  %v472_v57 = vld [vmem:[%s1548_s15 + $0x20] sm:$0xff]  ;;  %v475_v60 = vld [vmem:[%s1548_s15 + $0x38] sm:$0xff]  ;;  %v474_v63 = vld [vmem:[%s1548_s15 + $0x30] sm:$0xff] }
  0x1d   : > { %1158 = vmatprep.subr.mxu0 %v443_v20  ;;  %1297 = vmatpush3.msra.mxu1 %v682_v31  ;;  %v485_v56 = vunpack.c.l.s8.bf16 %v473_v54  ;;  %v484_v58 = vunpack.c.l.s8.bf16 %v472_v57  ;;  %v487_v59 = vunpack.c.h.s8.bf16 %v473_v54  ;;  %v486_v61 = vunpack.c.h.s8.bf16 %v472_v57  ;;  %v676_v3 = vld [vmem:[%s1811_s4 + $0x20] sm:$0xff]  ;;  %v675_v4 = vld [vmem:[%s1811_s4 + $0x18] sm:$0xff]  ;;  %v674_v5 = vld [vmem:[%s1811_s4 + $0x10] sm:$0xff] }
  0x1e   : > { %1159 = vmatpush3.msra.mxu0 %v427_v21  ;;  %1298 = vmatprep.subr.mxu1 %v681_v34  ;;  %v489_v62 = vunpack.c.l.s8.bf16 %v475_v60  ;;  %v488_v0 = vunpack.c.l.s8.bf16 %v474_v63  ;;  %v491_v1 = vunpack.c.h.s8.bf16 %v475_v60  ;;  %v490_v2 = vunpack.c.h.s8.bf16 %v474_v63  ;;  %v673_v6 = vld [vmem:[%s1811_s4 + $0x8] sm:$0xff]  ;;  %v672_v7 = vld [vmem:[%s1811_s4] sm:$0xff]  ;;  %v871_v8 = vld [vmem:[%s1813_s6 + $0x78] sm:$0xff] }
  0x1f   : > { %1160 = vmatprep.subr.mxu0 %v442_v23  ;;  %1299 = vmatpush3.msra.mxu1 %v681_v34  ;;  %v369_v10 = vld [vmem:[%s1688_s27] sm:$0xff]  ;;  %v370_v14 = vld [vmem:[%s1688_s27 + $0x8] sm:$0xff]  ;;  %v371_v20 = vld [vmem:[%s1688_s27 + $0x10] sm:$0xff] }
  0x20   : > { %1161 = vmatpush3.msra.mxu0 %v426_v24  ;;  %1300 = vmatprep.subr.mxu1 %v680_v37  ;;  %v386_v12 = vmul.f32 %v1690_v9, %v369_v10  ;;  %v387_v17 = vmul.f32 %v1690_v9, %v370_v14  ;;  %v388_v24 = vmul.f32 %v1690_v9, %v371_v20  ;;  %v373_v34 = vld [vmem:[%s1688_s27 + $0x20] sm:$0xff]  ;;  %v863_v54 = vld [vmem:[%s1813_s6 + $0x38] sm:$0xff]  ;;  %v378_v10 = vld [vmem:[%s1688_s27 + $0x48] sm:$0xff] }
  0x21   : > { %1162 = vmatprep.subr.mxu0 %v441_v26  ;;  %1301 = vmatpush3.msra.mxu1 %v680_v37  ;;  %v372_v26 = vld [vmem:[%s1688_s27 + $0x18] sm:$0xff]  ;;  %v864_v51 = vld [vmem:[%s1813_s6 + $0x40] sm:$0xff]  ;;  %v395_v14 = vmul.f32 %v1690_v9, %v378_v10 }
  0x22   : > { %1163 = vmatpush3.msra.mxu0 %v425_v27  ;;  %1302 = vmatprep.subr.mxu1 %v679_v41  ;;  %v870_v27 = vld [vmem:[%s1813_s6 + $0x70] sm:$0xff] }
  0x23   : > { %1164 = vmatprep.subr.mxu0 %v440_v29  ;;  %1303 = vmatpush3.msra.mxu1 %v679_v41 }
  0x24   : > { %1165 = vmatpush3.msra.mxu0 %v424_v30  ;;  %1304 = vmatprep.subr.mxu1 %v678_v45  ;;  %v869_v30 = vld [vmem:[%s1813_s6 + $0x68] sm:$0xff] }
  0x25   : > { %1166 = vmatprep.subr.mxu0 %v439_v32  ;;  %1305 = vmatpush3.msra.mxu1 %v678_v45  ;;  %v389_v32 = vmul.f32 %v1690_v9, %v372_v26 }
  0x26   : > { %1167 = vmatpush3.msra.mxu0 %v423_v33  ;;  %1306 = vmatprep.subr.mxu1 %v677_v47 }
  0x27   : > { %1168 = vmatprep.subr.mxu0 %v438_v35  ;;  %1307 = vmatpush3.msra.mxu1 %v677_v47  ;;  %v868_v35 = vld [vmem:[%s1813_s6 + $0x60] sm:$0xff] }
  0x28   : > { %1169 = vmatpush3.msra.mxu0 %v422_v36  ;;  %1308 = vmatprep.subr.mxu1 %v676_v3 }
  0x29   : > { %1170 = vmatprep.subr.mxu0 %v437_v38  ;;  %1309 = vmatpush3.msra.mxu1 %v676_v3  ;;  %v867_v38 = vld [vmem:[%s1813_s6 + $0x58] sm:$0xff]  ;;  %v860_v3 = vld [vmem:[%s1813_s6 + $0x20] sm:$0xff] }
  0x2a   : > { %1171 = vmatpush3.msra.mxu0 %v421_v40  ;;  %1310 = vmatprep.subr.mxu1 %v675_v4  ;;  %v390_v40 = vmul.f32 %v1690_v9, %v373_v34  ;;  %v382_v34 = vld [vmem:[%s1688_s27 + $0x68] sm:$0xff] }
  0x2b   : > { %1172 = vmatprep.subr.mxu0 %v436_v42  ;;  %1311 = vmatpush3.msra.mxu1 %v675_v4  ;;  %v374_v42 = vld [vmem:[%s1688_s27 + $0x28] sm:$0xff] }
  0x2c   : > { %1173 = vmatpush3.msra.mxu0 %v420_v43  ;;  %1312 = vmatprep.subr.mxu1 %v674_v5  ;;  %v866_v43 = vld [vmem:[%s1813_s6 + $0x50] sm:$0xff]  ;;  %v391_v48 = vmul.f32 %v1690_v9, %v374_v42 }
  0x2d   : > { %557 = vmatmul.mubr.bf16.vlgmr.msra.gmra.mxu0 %v476_v44  ;;  %1313 = vmatpush3.msra.mxu1 %v674_v5 }
  0x2e   : > { %564 = vmatprep.mubr.bf16.mxu0 %v479_v46  ;;  %1314 = vmatprep.subr.mxu1 %v673_v6  ;;  %v865_v46 = vld [vmem:[%s1813_s6 + $0x48] sm:$0xff] }
  0x2f   : > { %1315 = vmatpush3.msra.mxu1 %v673_v6 }
  0x30   : > { %1316 = vmatprep.subr.mxu1 %v672_v7 }
  0x31   : > { %1317 = vmatpush3.msra.mxu1 %v672_v7 }
  0x32   : > { %1342 = vmatprep.subr.mxu1 %v871_v8 }
  0x35   : > { %565 = vmatmul.mubr.bf16.gmra.mxu0 %v478_v49 }
  0x36   : > { %572 = vmatprep.mubr.bf16.mxu0 %v481_v50  ;;  %v375_v50 = vld [vmem:[%s1688_s27 + $0x30] sm:$0xff] }
  0x3d   : > { %573 = vmatmul.mubr.bf16.gmra.mxu0 %v480_v52 }
  0x3e   : > { %580 = vmatprep.mubr.bf16.mxu0 %v483_v53 }
  0x45   : > { %581 = vmatmul.mubr.bf16.gmra.mxu0 %v482_v55 }
  0x46   : > { %588 = vmatprep.mubr.bf16.mxu0 %v485_v56  ;;  %v392_v56 = vmul.f32 %v1690_v9, %v375_v50 }
  0x4d   : > { %589 = vmatmul.mubr.bf16.gmra.mxu0 %v484_v58  ;;  %v376_v58 = vld [vmem:[%s1688_s27 + $0x38] sm:$0xff] }
  0x4e   : > { %596 = vmatprep.mubr.bf16.mxu0 %v487_v59  ;;  %v862_v59 = vld [vmem:[%s1813_s6 + $0x30] sm:$0xff] }
  0x55   : > { %597 = vmatmul.mubr.bf16.gmra.mxu0 %v486_v61 }
  0x56   : > { %604 = vmatprep.mubr.bf16.mxu0 %v489_v62  ;;  %v861_v62 = vld [vmem:[%s1813_s6 + $0x28] sm:$0xff] }
  0x5d   : > { %605 = vmatmul.mubr.bf16.gmra.mxu0 %v488_v0  ;;  %v393_v0 = vmul.f32 %v1690_v9, %v376_v58 }
  0x5e   : > { %612 = vmatprep.mubr.bf16.mxu0 %v491_v1 }
  0x65   : > { %613 = vmatmul.mubr.bf16.gmra.mxu0 %v490_v2  ;;  %v377_v2 = vld [vmem:[%s1688_s27 + $0x40] sm:$0xff] }
  0x66   : > { %v394_v7 = vmul.f32 %v1690_v9, %v377_v2 }
  0xed   : > { %v1174_v11 = vpop.f32.mrf.mxu0 }
  0xef   : > { %v1175_v13 = vpop.f32.mrf.mxu0 }
  0xf0   : > { %v1176_v15 = vadd.f32 %v1175_v13, %v1174_v11 }
  0xf1   : > { %v1177_v16 = vpop.f32.mrf.mxu0 }
  0xf2   : > { %v621_v18 = vadd.f32 %v1176_v15, %v386_v12 }
  0xf3   : > { %v1178_v19 = vpop.f32.mrf.mxu0 }
  0xf4   : > { %v1179_v21 = vadd.f32 %v1178_v19, %v1177_v16  ;;  %1318 = vmatprep.mubr.f32.mxu1 %v621_v18  ;;  %v379_v16 = vld [vmem:[%s1688_s27 + $0x50] sm:$0xff] }
  0xf5   : > { %v1180_v22 = vpop.f32.mrf.mxu0  ;;  %v396_v20 = vmul.f32 %v1690_v9, %v379_v16 }
  0xf6   : > { %v622_v23 = vadd.f32 %v1179_v21, %v387_v17 }
  0xf7   : > { %v1181_v25 = vpop.f32.mrf.mxu0 }
  0xf8   : > { %v1182_v28 = vadd.f32 %v1181_v25, %v1180_v22  ;;  %1319 = vmatmul.mubr.f32.vlgmr.msra.gmra.mxu1 %v622_v23  ;;  %v380_v22 = vld [vmem:[%s1688_s27 + $0x58] sm:$0xff] }
  0xf9   : > { %v1183_v29 = vpop.f32.mrf.mxu0  ;;  %1343 = vmatpush3.msra.mxu1 %v871_v8  ;;  %v397_v26 = vmul.f32 %v1690_v9, %v380_v22 }
  0xfa   : > { %v623_v31 = vadd.f32 %v1182_v28, %v388_v24  ;;  %1344 = vmatprep.subr.mxu1 %v870_v27  ;;  %v381_v28 = vld [vmem:[%s1688_s27 + $0x60] sm:$0xff] }
  0xfb   : > { %v1184_v33 = vpop.f32.mrf.mxu0  ;;  %1345 = vmatpush3.msra.mxu1 %v870_v27 }
  0xfc   : > { %v1185_v36 = vadd.f32 %v1184_v33, %v1183_v29  ;;  %1321 = vmatprep.mubr.f32.mxu1 %v623_v31  ;;  %1346 = vmatprep.subr.mxu1 %v869_v30 }
  0xfd   : > { %v1186_v37 = vpop.f32.mrf.mxu0  ;;  %1347 = vmatpush3.msra.mxu1 %v869_v30 }
  0xfe   : > { %v624_v39 = vadd.f32 %v1185_v36, %v389_v32  ;;  %1348 = vmatprep.subr.mxu1 %v868_v35  ;;  %v398_v32 = vmul.f32 %v1690_v9, %v381_v28 }
  0xff   : > { %v1187_v41 = vpop.f32.mrf.mxu0  ;;  %1349 = vmatpush3.msra.mxu1 %v868_v35 }
 0x100   : > { %v1188_v44 = vadd.f32 %v1187_v41, %v1186_v37  ;;  %1322 = vmatmul.mubr.f32.gmra.mxu1 %v624_v39  ;;  %1350 = vmatprep.subr.mxu1 %v867_v38 }
 0x101   : > { %v1189_v45 = vpop.f32.mrf.mxu0  ;;  %1351 = vmatpush3.msra.mxu1 %v867_v38  ;;  %v399_v38 = vmul.f32 %v1690_v9, %v382_v34 }
 0x102   : > { %v625_v47 = vadd.f32 %v1188_v44, %v390_v40  ;;  %1352 = vmatprep.subr.mxu1 %v866_v43  ;;  %v383_v40 = vld [vmem:[%s1688_s27 + $0x70] sm:$0xff] }
 0x103   : > { %v1190_v49 = vpop.f32.mrf.mxu0  ;;  %1353 = vmatpush3.msra.mxu1 %v866_v43  ;;  %v400_v44 = vmul.f32 %v1690_v9, %v383_v40 }
 0x104   : > { %v1191_v52 = vadd.f32 %v1190_v49, %v1189_v45  ;;  %1324 = vmatprep.mubr.f32.mxu1 %v625_v47  ;;  %1354 = vmatprep.subr.mxu1 %v865_v46 }
 0x105   : > { %v1192_v53 = vpop.f32.mrf.mxu0  ;;  %1355 = vmatpush3.msra.mxu1 %v865_v46  ;;  %v384_v46 = vld [vmem:[%s1688_s27 + $0x78] sm:$0xff] }
 0x106   : > { %v626_v55 = vadd.f32 %v1191_v52, %v391_v48  ;;  %1356 = vmatprep.subr.mxu1 %v864_v51  ;;  %v401_v50 = vmul.f32 %v1690_v9, %v384_v46  ;;  %v857_v9 = vld [vmem:[%s1813_s6 + $0x8] sm:$0xff] }
 0x107   : > { %v1193_v57 = vpop.f32.mrf.mxu0  ;;  %1357 = vmatpush3.msra.mxu1 %v864_v51 }
 0x108   : > { %v1194_v60 = vadd.f32 %v1193_v57, %v1192_v53  ;;  %1325 = vmatmul.mubr.f32.gmra.mxu1 %v626_v55  ;;  %1358 = vmatprep.subr.mxu1 %v863_v54  ;;  %v858_v55 = vld [vmem:[%s1813_s6 + $0x10] sm:$0xff]  ;;  %v1137_v57 = vld [vmem:[%s1812_s5] ss:$0 sm:$0xff] }
 0x109   : > { %v1195_v61 = vpop.f32.mrf.mxu0  ;;  %1359 = vmatpush3.msra.mxu1 %v863_v54  ;;  %v859_v54 = vld [vmem:[%s1813_s6 + $0x18] sm:$0xff] }
 0x10a   : > { %v627_v63 = vadd.f32 %v1194_v60, %v392_v56  ;;  %1360 = vmatprep.subr.mxu1 %v862_v59  ;;  %v856_v56 = vld [vmem:[%s1813_s6] sm:$0xff] }
 0x10b   : > { %v1196_v1 = vpop.f32.mrf.mxu0  ;;  %1361 = vmatpush3.msra.mxu1 %v862_v59 }
 0x10c   : > { %v1197_v4 = vadd.f32 %v1196_v1, %v1195_v61  ;;  %1327 = vmatprep.mubr.f32.mxu1 %v627_v63  ;;  %1362 = vmatprep.subr.mxu1 %v861_v62 }
 0x10d   : > { %v1198_v5 = vpop.f32.mrf.mxu0  ;;  %1363 = vmatpush3.msra.mxu1 %v861_v62 }
 0x10e   : > { %v628_v6 = vadd.f32 %v1197_v4, %v393_v0  ;;  %1364 = vmatprep.subr.mxu1 %v860_v3 }
 0x10f   : > { %v1199_v8 = vpop.f32.mrf.mxu0  ;;  %1365 = vmatpush3.msra.mxu1 %v860_v3 }
 0x110   : > { %v1200_v11 = vadd.f32 %v1199_v8, %v1198_v5  ;;  %1328 = vmatmul.mubr.f32.gmra.mxu1 %v628_v6  ;;  %1366 = vmatprep.subr.mxu1 %v859_v54 }
 0x111   : > { %v1201_v12 = vpop.f32.mrf.mxu0  ;;  %1367 = vmatpush3.msra.mxu1 %v859_v54 }
 0x112   : > { %v629_v13 = vadd.f32 %v1200_v11, %v394_v7  ;;  %1368 = vmatprep.subr.mxu1 %v858_v55 }
 0x113   : > { %v1202_v15 = vpop.f32.mrf.mxu0  ;;  %1369 = vmatpush3.msra.mxu1 %v858_v55 }
 0x114   : > { %v1203_v17 = vadd.f32 %v1202_v15, %v1201_v12  ;;  %1330 = vmatprep.mubr.f32.mxu1 %v629_v13  ;;  %1370 = vmatprep.subr.mxu1 %v857_v9 }
 0x115   : > { %v1204_v18 = vpop.f32.mrf.mxu0  ;;  %1371 = vmatpush3.msra.mxu1 %v857_v9 }
 0x116   : > { %v630_v19 = vadd.f32 %v1203_v17, %v395_v14  ;;  %1372 = vmatprep.subr.mxu1 %v856_v56 }
 0x117   : > { %v1205_v21 = vpop.f32.mrf.mxu0  ;;  %1373 = vmatpush3.msra.mxu1 %v856_v56 }
 0x118   : > { %v1206_v23 = vadd.f32 %v1205_v21, %v1204_v18  ;;  %1331 = vmatmul.mubr.f32.gmra.mxu1 %v630_v19 }
 0x119   : > { %v1207_v24 = vpop.f32.mrf.mxu0 }
 0x11a   : > { %v631_v25 = vadd.f32 %v1206_v23, %v396_v20 }
 0x11b   : > { %v1208_v27 = vpop.f32.mrf.mxu0 }
 0x11c   : > { %v1209_v29 = vadd.f32 %v1208_v27, %v1207_v24  ;;  %1333 = vmatprep.mubr.f32.mxu1 %v631_v25 }
 0x11d   : > { %v1210_v30 = vpop.f32.mrf.mxu0 }
 0x11e   : > { %v632_v31 = vadd.f32 %v1209_v29, %v397_v26 }
 0x11f   : > { %v1211_v33 = vpop.f32.mrf.mxu0 }
 0x120   : > { %v1212_v35 = vadd.f32 %v1211_v33, %v1210_v30  ;;  %1334 = vmatmul.mubr.f32.gmra.mxu1 %v632_v31 }
 0x121   : > { %v1213_v36 = vpop.f32.mrf.mxu0 }
 0x122   : > { %v633_v37 = vadd.f32 %v1212_v35, %v398_v32 }
 0x123   : > { %v1214_v39 = vpop.f32.mrf.mxu0 }
 0x124   : > { %v1215_v41 = vadd.f32 %v1214_v39, %v1213_v36  ;;  %1336 = vmatprep.mubr.f32.mxu1 %v633_v37 }
 0x125   : > { %v1216_v42 = vpop.f32.mrf.mxu0 }
 0x126   : > { %v634_v43 = vadd.f32 %v1215_v41, %v399_v38 }
 0x127   : > { %v1217_v45 = vpop.f32.mrf.mxu0 }
 0x128   : > { %v1218_v47 = vadd.f32 %v1217_v45, %v1216_v42  ;;  %1337 = vmatmul.mubr.f32.gmra.mxu1 %v634_v43  ;;  %v1138_v43 = vld [vmem:[%s1814_s7] ss:$0 sm:$0xff] }
 0x129   : > { %v1219_v48 = vpop.f32.mrf.mxu0 }
 0x12a   : > { %v635_v49 = vadd.f32 %v1218_v47, %v400_v44 }
 0x12b   : > { %v1220_v51 = vpop.f32.mrf.mxu0 }
 0x12c   : > { %v1221_v52 = vadd.f32 %v1220_v51, %v1219_v48  ;;  %1339 = vmatprep.mubr.f32.mxu1 %v635_v49 }
 0x12e   : > { %v636_v53 = vadd.f32 %v1221_v52, %v401_v50 }
 0x130   : > { %1340 = vmatmul.mubr.f32.gmra.mxu1 %v636_v53 }
 0x1b8   : > { %v1320_v58 = vpop.f32.mrf.mxu1 }
 0x1b9   : > { %v767_v59 = vadd.f32 %v1320_v58, %v1137_v57 }
 0x1ba   : > { %v761_v60 = vpop.f32.mrf.mxu1 }
 0x1bb   : > { %v762_v61 = vadd.f32 %v1137_v57, %v761_v60  ;;  %v841_v63 = vmax.f32 %v767_v59, 0.0 }
 0x1bd   : > { %v840_v62 = vmax.f32 %v762_v61, 0.0 }
 0x1bf   : > { %1374 = vmatprep.mubr.f32.mxu1 %v840_v62 }
 0x1c0   : > { %v1323_v0 = vpop.f32.mrf.mxu1  ;;  %1375 = vmatmul.mubr.f32.vlgmr.msra.gmra.mxu1 %v841_v63 }
 0x1c1   : > { %v777_v1 = vadd.f32 %v1323_v0, %v1137_v57 }
 0x1c2   : > { %v771_v2 = vpop.f32.mrf.mxu1 }
 0x1c3   : > { %v772_v3 = vadd.f32 %v1137_v57, %v771_v2  ;;  %v843_v5 = vmax.f32 %v777_v1, 0.0 }
 0x1c5   : > { %v842_v4 = vmax.f32 %v772_v3, 0.0 }
 0x1c7   : > { %1377 = vmatprep.mubr.f32.mxu1 %v842_v4 }
 0x1c8   : > { %v1326_v6 = vpop.f32.mrf.mxu1  ;;  %1378 = vmatmul.mubr.f32.gmra.mxu1 %v843_v5 }
 0x1c9   : > { %v787_v7 = vadd.f32 %v1326_v6, %v1137_v57 }
 0x1ca   : > { %v781_v8 = vpop.f32.mrf.mxu1 }
 0x1cb   : > { %v782_v10 = vadd.f32 %v1137_v57, %v781_v8  ;;  %v845_v12 = vmax.f32 %v787_v7, 0.0 }
 0x1cd   : > { %v844_v11 = vmax.f32 %v782_v10, 0.0 }
 0x1cf   : > { %1380 = vmatprep.mubr.f32.mxu1 %v844_v11 }
 0x1d0   : > { %v1329_v13 = vpop.f32.mrf.mxu1  ;;  %1381 = vmatmul.mubr.f32.gmra.mxu1 %v845_v12 }
 0x1d1   : > { %v797_v14 = vadd.f32 %v1329_v13, %v1137_v57 }
 0x1d2   : > { %v791_v15 = vpop.f32.mrf.mxu1 }
 0x1d3   : > { %v792_v16 = vadd.f32 %v1137_v57, %v791_v15  ;;  %v847_v18 = vmax.f32 %v797_v14, 0.0 }
 0x1d5   : > { %v846_v17 = vmax.f32 %v792_v16, 0.0 }
 0x1d7   : > { %1383 = vmatprep.mubr.f32.mxu1 %v846_v17 }
 0x1d8   : > { %v1332_v19 = vpop.f32.mrf.mxu1  ;;  %1384 = vmatmul.mubr.f32.gmra.mxu1 %v847_v18 }
 0x1d9   : > { %v807_v20 = vadd.f32 %v1332_v19, %v1137_v57 }
 0x1da   : > { %v801_v21 = vpop.f32.mrf.mxu1 }
 0x1db   : > { %v802_v22 = vadd.f32 %v1137_v57, %v801_v21  ;;  %v849_v24 = vmax.f32 %v807_v20, 0.0 }
 0x1dd   : > { %v848_v23 = vmax.f32 %v802_v22, 0.0 }
 0x1df   : > { %1386 = vmatprep.mubr.f32.mxu1 %v848_v23 }
 0x1e0   : > { %v1335_v25 = vpop.f32.mrf.mxu1  ;;  %1387 = vmatmul.mubr.f32.gmra.mxu1 %v849_v24 }
 0x1e1   : > { %v817_v26 = vadd.f32 %v1335_v25, %v1137_v57 }
 0x1e2   : > { %v811_v27 = vpop.f32.mrf.mxu1 }
 0x1e3   : > { %v812_v28 = vadd.f32 %v1137_v57, %v811_v27  ;;  %v851_v30 = vmax.f32 %v817_v26, 0.0 }
 0x1e5   : > { %v850_v29 = vmax.f32 %v812_v28, 0.0 }
 0x1e7   : > { %1389 = vmatprep.mubr.f32.mxu1 %v850_v29 }
 0x1e8   : > { %v1338_v31 = vpop.f32.mrf.mxu1  ;;  %1390 = vmatmul.mubr.f32.gmra.mxu1 %v851_v30 }
 0x1e9   : > { %v827_v32 = vadd.f32 %v1338_v31, %v1137_v57 }
 0x1ea   : > { %v821_v33 = vpop.f32.mrf.mxu1 }
 0x1eb   : > { %v822_v34 = vadd.f32 %v1137_v57, %v821_v33  ;;  %v853_v36 = vmax.f32 %v827_v32, 0.0 }
 0x1ed   : > { %v852_v35 = vmax.f32 %v822_v34, 0.0 }
 0x1ef   : > { %1392 = vmatprep.mubr.f32.mxu1 %v852_v35 }
 0x1f0   : > { %v1341_v37 = vpop.f32.mrf.mxu1  ;;  %1393 = vmatmul.mubr.f32.gmra.mxu1 %v853_v36 }
 0x1f1   : > { %v837_v38 = vadd.f32 %v1341_v37, %v1137_v57 }
 0x1f2   : > { %v831_v39 = vpop.f32.mrf.mxu1 }
 0x1f3   : > { %v832_v40 = vadd.f32 %v1137_v57, %v831_v39  ;;  %v855_v42 = vmax.f32 %v837_v38, 0.0 }
 0x1f5   : > { %v854_v41 = vmax.f32 %v832_v40, 0.0 }
 0x1f7   : > { %1395 = vmatprep.mubr.f32.mxu1 %v854_v41 }
 0x1f8   : > { %1396 = vmatmul.mubr.f32.gmra.mxu1 %v855_v42 }
 0x280   : > { %v1376_v44 = vpop.f32.mrf.mxu1 }
 0x281   : > { %v951_v45 = vadd.f32 %v1376_v44, %v1138_v43 }
 0x282   : > { %v945_v46 = vpop.f32.mrf.mxu1 }
 0x283   : > { %1025 = vst [vmem:[%s1780_s28 + $0x8] sm:$0xff] %v951_v45  ;;  %v946_v47 = vadd.f32 %v1138_v43, %v945_v46 }
 0x285   : > { %1024 = vst [vmem:[%s1780_s28] sm:$0xff] %v946_v47 }
 0x288   : > { %v1379_v48 = vpop.f32.mrf.mxu1 }
 0x289   : > { %v961_v49 = vadd.f32 %v1379_v48, %v1138_v43 }
 0x28a   : > { %v955_v50 = vpop.f32.mrf.mxu1 }
 0x28b   : > { %1027 = vst [vmem:[%s1780_s28 + $0x18] sm:$0xff] %v961_v49  ;;  %v956_v51 = vadd.f32 %v1138_v43, %v955_v50 }
 0x28d   : > { %1026 = vst [vmem:[%s1780_s28 + $0x10] sm:$0xff] %v956_v51 }
 0x290   : > { %v1382_v52 = vpop.f32.mrf.mxu1 }
 0x291   : > { %v971_v53 = vadd.f32 %v1382_v52, %v1138_v43 }
 0x292   : > { %v965_v54 = vpop.f32.mrf.mxu1 }
 0x293   : > { %1029 = vst [vmem:[%s1780_s28 + $0x28] sm:$0xff] %v971_v53  ;;  %v966_v55 = vadd.f32 %v1138_v43, %v965_v54 }
 0x295   : > { %1028 = vst [vmem:[%s1780_s28 + $0x20] sm:$0xff] %v966_v55 }
 0x298   : > { %v1385_v9 = vpop.f32.mrf.mxu1 }
 0x299   : > { %v981_v56 = vadd.f32 %v1385_v9, %v1138_v43 }
 0x29a   : > { %v975_v57 = vpop.f32.mrf.mxu1 }
 0x29b   : > { %1031 = vst [vmem:[%s1780_s28 + $0x38] sm:$0xff] %v981_v56  ;;  %v976_v58 = vadd.f32 %v1138_v43, %v975_v57 }
 0x29d   : > { %1030 = vst [vmem:[%s1780_s28 + $0x30] sm:$0xff] %v976_v58 }
 0x2a0   : > { %v1388_v59 = vpop.f32.mrf.mxu1 }
 0x2a1   : > { %v991_v60 = vadd.f32 %v1388_v59, %v1138_v43 }
 0x2a2   : > { %v985_v61 = vpop.f32.mrf.mxu1 }
 0x2a3   : > { %1033 = vst [vmem:[%s1780_s28 + $0x48] sm:$0xff] %v991_v60  ;;  %v986_v62 = vadd.f32 %v1138_v43, %v985_v61 }
 0x2a5   : > { %1032 = vst [vmem:[%s1780_s28 + $0x40] sm:$0xff] %v986_v62 }
 0x2a8   : > { %v1391_v63 = vpop.f32.mrf.mxu1 }
 0x2a9   : > { %v1001_v0 = vadd.f32 %v1391_v63, %v1138_v43 }
 0x2aa   : > { %v995_v1 = vpop.f32.mrf.mxu1 }
 0x2ab   : > { %1035 = vst [vmem:[%s1780_s28 + $0x58] sm:$0xff] %v1001_v0  ;;  %v996_v2 = vadd.f32 %v1138_v43, %v995_v1 }
 0x2ad   : > { %1034 = vst [vmem:[%s1780_s28 + $0x50] sm:$0xff] %v996_v2 }
 0x2b0   : > { %v1394_v3 = vpop.f32.mrf.mxu1 }
 0x2b1   : > { %v1011_v4 = vadd.f32 %v1394_v3, %v1138_v43 }
 0x2b2   : > { %v1005_v5 = vpop.f32.mrf.mxu1 }
 0x2b3   : > { %1037 = vst [vmem:[%s1780_s28 + $0x68] sm:$0xff] %v1011_v4  ;;  %v1006_v6 = vadd.f32 %v1138_v43, %v1005_v5 }
 0x2b5   : > { %1036 = vst [vmem:[%s1780_s28 + $0x60] sm:$0xff] %v1006_v6 }
 0x2b8   : > { %v1397_v7 = vpop.f32.mrf.mxu1 }
 0x2b9   : > { %v1021_v8 = vadd.f32 %v1397_v7, %v1138_v43 }
 0x2ba   : > { %v1015_v10 = vpop.f32.mrf.mxu1 }
 0x2bb   : > { %1039 = vst [vmem:[%s1780_s28 + $0x78] sm:$0xff] %v1021_v8  ;;  %v1016_v11 = vadd.f32 %v1138_v43, %v1015_v10 }
 0x2bd   : > { %1038 = vst [vmem:[%s1780_s28 + $0x70] sm:$0xff] %v1016_v11 }
 0x2be PF: > { %s19_s9 = sadd.s32 1, %s1444_s9   ;;  %s1816_s29 = smov %s1440_s30 }
 0x2bf   : > { %p16_p6 = scmp.ge.s32.totalorder %s19_s9, 4   ;;  %s1817_s30 = smov %s1819_s0 }
 0x2c1   :  { %18 = sbr.rel (!%p16_p6) target bundleno = 2 (0x2), region = 94 }

</bundles_post_ra>
